<compile_context>
chip_gen: v6e
topology: v6e:2x2x1
jax: 0.10.0
libtpu: 0.0.40
codegen_flags: <defaults>
</compile_context>

<pallas_src>
import functools

import jax
import jax.numpy as jnp
from jax.experimental import pallas as pl
from jax.experimental.pallas import tpu as pltpu


def _causal_conv_tanh_kernel(x_ref, w_ref, b_ref, o_ref, xp_ref, *mxu_scratch,
                             k, c_in, use_mxu):
    # x_ref : (Bt, C_in, L)        unpadded input rows (resident across li)
    # w_ref : (k*C_in, E, 1) f32   [VPU]  row m = j*C_in + c -> weight[:, c, j]
    #         (E, k*C_in)  bf16    [MXU]  col m = j*C_in + c -> weight[:, c, j]
    # b_ref : (E, 1) f32
    # o_ref : (Bt, E, Lt)
    # xp_ref: (Bt, C_in, (k-1)+L)  persistent per-bb scratch: [0]*(k-1) ++ x
    # mxu_scratch: (slab_ref,) bf16 (Bt, k*C_in, Lt) -- MXU path only.
    bt, _, L = x_ref.shape
    E = o_ref.shape[1]
    lt = o_ref.shape[2]
    pad = k - 1
    single_tile = (lt == L)
    li = pl.program_id(1)

    def fill_halo():
        if pad > 0:
            xp_ref[:, :, :pad] = jnp.zeros((bt, c_in, pad), x_ref.dtype)
        xp_ref[:, :, pad:] = x_ref[...]

    if single_tile:
        fill_halo()
        base = 0
    else:
        pl.when(li == 0)(fill_halo)           # once per batch block
        base = pl.multiple_of(li * lt, 128)   # lt is a multiple of 128 here

    def tap(j):
        # tap j at output position t reads xp[..., base + t + j]
        if single_tile:
            return xp_ref[:, :, j:j + lt]                 # static slice
        return xp_ref[:, :, pl.ds(base + j, lt)]          # lane-hinted dynamic

    bias = b_ref[...]                                     # (E, 1)

    if use_mxu:
        slab_ref = mxu_scratch[0]                         # (Bt, k*C_in, lt) bf16
        for j in range(k):                                # build im2col slab in
            slab_ref[:, j * c_in:(j + 1) * c_in, :] = (   # scratch: no concat
                tap(j).astype(jnp.bfloat16))
        w = w_ref[...]                                    # (E, k*C_in) bf16
        for b in range(bt):                               # deep dot per row
            acc = jnp.dot(w, slab_ref[b], preferred_element_type=jnp.float32)
            o_ref[b] = jnp.tanh(acc + bias)
    else:
        # Tiny contraction: pure-VPU broadcast FMAs (k*C_in of them per tile).
        acc = jnp.zeros((bt, E, lt), jnp.float32)
        for j in range(k):
            t = tap(j)                                    # (Bt, C_in, lt)
            for c in range(c_in):
                wv = w_ref[j * c_in + c][None]            # (1, E, 1)
                acc = acc + wv * t[:, c:c + 1, :]         # (Bt, E, lt)
        o_ref[...] = jnp.tanh(acc + bias[None])


def _pick_lt(L):
    """Sequence tile: full L when small/unaligned, else a 128-multiple divisor."""
    if L <= 1024 or L % 128 != 0:
        return L
    for t in (2048, 1024, 512, 256, 128):
        if L % t == 0:
            return t
    return L


def _vmem_per_row_bytes(c_in, L, E, lt, k, use_mxu):
    """Honest per-batch-row VMEM footprint (input block, scratch, temps, output)."""
    f = 4
    in_blk = 2 * c_in * L * f                 # double-buffered input block
    xp = c_in * (L + k - 1) * f               # persistent padded scratch
    taps = k * c_in * lt * f                  # tap slice temporaries
    acc = 3 * E * lt * f                      # accumulator + elementwise temps
    out = 2 * E * lt * f                      # double-buffered output tile
    slab = (k * c_in * lt * 2) if use_mxu else 0
    return in_blk + xp + taps + acc + out + slab


def _pick_bt(B, per_row, budget):
    best = 1
    for cand in range(1, B + 1):
        if B % cand == 0 and cand * per_row <= budget:
            best = cand
    return best


def context_embedding_forward(x, weight, bias):
    """x: (B, C_in, L) f32, weight: (E, C_in, k) f32, bias: (E,) f32 -> (B, E, L)."""
    B, C_in, L = x.shape
    E, _, k = weight.shape

    # MXU once the contraction depth is worthwhile; VPU only for tiny C_in*k.
    use_mxu = (C_in * k) >= 32

    Lt = _pick_lt(L)
    n_lt = L // Lt

    # VMEM limit derived from actual chip capacity (v7x: 64 MiB, v5e/v6e: 128 MiB).
    try:
        cap = pltpu.get_tpu_info().vmem_capacity_bytes
    except Exception:
        cap = 64 * 1024 * 1024
    vmem_limit = int(min(cap * 3 // 4, 96 * 1024 * 1024))
    per_row = _vmem_per_row_bytes(C_in, L, E, Lt, k, use_mxu)
    Bt = _pick_bt(B, per_row, budget=vmem_limit // 2)

    # Weight laid out so per-tap access is a leading-axis index (VPU) or one
    # folded contraction (MXU, bf16 operands); flat tap index m = j*C_in + c.
    if use_mxu:
        w_prep = (jnp.transpose(weight, (0, 2, 1))
                  .reshape(E, k * C_in).astype(jnp.bfloat16))
        w_spec = pl.BlockSpec((E, k * C_in), lambda bb, li: (0, 0))
    else:
        w_prep = jnp.transpose(weight, (2, 1, 0)).reshape(k * C_in, E)[..., None]
        w_spec = pl.BlockSpec((k * C_in, E, 1), lambda bb, li: (0, 0, 0))
    bias2d = bias.reshape(E, 1).astype(jnp.float32)

    scratch = [pltpu.VMEM((Bt, C_in, L + k - 1), x.dtype)]
    if use_mxu:
        scratch.append(pltpu.VMEM((Bt, k * C_in, Lt), jnp.bfloat16))

    kernel = functools.partial(_causal_conv_tanh_kernel,
                               k=k, c_in=C_in, use_mxu=use_mxu)

    cost = pl.CostEstimate(
        flops=2 * B * E * C_in * k * L,
        transcendentals=B * E * L,
        bytes_accessed=4 * (B * C_in * L + B * E * L + E * C_in * k + E),
    )

    return pl.pallas_call(
        kernel,
        out_shape=jax.ShapeDtypeStruct((B, E, L), jnp.float32),
        grid=(B // Bt, n_lt),
        in_specs=[
            pl.BlockSpec((Bt, C_in, L), lambda bb, li: (bb, 0, 0)),
            w_spec,
            pl.BlockSpec((E, 1), lambda bb, li: (0, 0)),
        ],
        out_specs=pl.BlockSpec((Bt, E, Lt), lambda bb, li: (bb, 0, li)),
        scratch_shapes=scratch,
        compiler_params=pltpu.CompilerParams(
            # li must be sequential per bb (scratch filled at li == 0).
            dimension_semantics=("parallel", "arbitrary"),
            vmem_limit_bytes=vmem_limit,
        ),
        cost_estimate=cost,
    )(x, w_prep, bias2d)


def _reference(x, weight, bias):
    """Pure-JAX reference of CausalConv1d + tanh."""
    B, C_in, L = x.shape
    E, _, k = weight.shape
    x_pad = jnp.pad(x, ((0, 0), (0, 0), (k - 1, 0)))
    out = jnp.zeros((B, E, L), jnp.float32)
    for j in range(k):
        out = out + jnp.einsum("oc,bcl->bol", weight[:, :, j], x_pad[:, :, j: j + L])
    out = out + bias[None, :, None]
    return jnp.tanh(out)


if __name__ == "__main__":
    # Small shapes consistent with the module: in_channels=1, embedding_size, k=5.
    B, C_in, L = 2, 1, 16
    E, k = 32, 5

    key = jax.random.PRNGKey(0)
    kx, kw, kb = jax.random.split(key, 3)

    x = jax.random.normal(kx, (B, C_in, L), dtype=jnp.float32)

    # Deterministic parameter init (matches PyTorch Conv1d's uniform(-bound, bound)).
    bound = 1.0 / (C_in * k) ** 0.5
    weight = jax.random.uniform(kw, (E, C_in, k), jnp.float32, -bound, bound)
    bias = jax.random.uniform(kb, (E,), jnp.float32, -bound, bound)

    out = jax.jit(context_embedding_forward)(x, weight, bias)
    out = jax.block_until_ready(out)

    ref = _reference(x, weight, bias)
    assert out.shape == (B, E, L)
    # VPU (f32) path is exact; the bf16 MXU path (large C_in*k) is looser.
    atol = 1e-5 if (C_in * k) < 32 else 2e-2
    assert jnp.allclose(out, ref, atol=atol, rtol=1e-4)

    print("KERNEL_OK")
</pallas_src>

<mosaic_0001>
module attributes {stable_mosaic.version = 11 : i64} {
  func.func @_causal_conv_tanh_kernel(%arg0: i32, %arg1: i32, %arg2: memref<2x1x16xf32, #tpu.memory_space<vmem>>, %arg3: memref<5x32x1xf32, #tpu.memory_space<vmem>>, %arg4: memref<32x1xf32, #tpu.memory_space<vmem>>, %arg5: memref<2x32x16xf32, #tpu.memory_space<vmem>>, %arg6: memref<2x1x20xf32, #tpu.memory_space<vmem>>) attributes {dimension_semantics = [#tpu.dimension_semantics<parallel>, #tpu.dimension_semantics<arbitrary>], iteration_bounds = array<i64: 1, 1>, scalar_prefetch = 0 : i64, scratch_operands = 1 : i64, tpu.core_type = #tpu.core_type<tc>, window_params = [{transform_indices = @transform_0, window_bounds = array<i64: 2, 1, 16>}, {pipeline_mode = #tpu.pipeline_mode<synchronous>, transform_indices = @transform_1, window_bounds = array<i64: 5, 32, 1>}, {pipeline_mode = #tpu.pipeline_mode<synchronous>, transform_indices = @transform_2, window_bounds = array<i64: 32, 1>}, {transform_indices = @transform_3, window_bounds = array<i64: 2, 32, 16>}]} {
    %cst = arith.constant 0.000000e+00 : f32
    %0 = vector.broadcast %cst : f32 to vector<2x1x4xf32>
    %c0 = arith.constant 0 : index
    %c0_0 = arith.constant 0 : index
    %c0_1 = arith.constant 0 : index
    %1 = vector.load %arg6[%c0, %c0_0, %c0_1] : memref<2x1x20xf32, #tpu.memory_space<vmem>>, vector<2x1x4xf32>
    tpu.vector_store %arg6[%c0, %c0_0, %c0_1], %0 {strides = array<i32>} : memref<2x1x20xf32, #tpu.memory_space<vmem>>, vector<2x1x4xf32>,
    %c0_2 = arith.constant 0 : index
    %c0_3 = arith.constant 0 : index
    %c0_4 = arith.constant 0 : index
    %2 = vector.load %arg2[%c0_2, %c0_3, %c0_4] : memref<2x1x16xf32, #tpu.memory_space<vmem>>, vector<2x1x16xf32>
    %c0_5 = arith.constant 0 : index
    %c0_6 = arith.constant 0 : index
    %c4 = arith.constant 4 : index
    %3 = vector.load %arg6[%c0_5, %c0_6, %c4] : memref<2x1x20xf32, #tpu.memory_space<vmem>>, vector<2x1x16xf32>
    tpu.vector_store %arg6[%c0_5, %c0_6, %c4], %2 {strides = array<i32>} : memref<2x1x20xf32, #tpu.memory_space<vmem>>, vector<2x1x16xf32>,
    %c0_7 = arith.constant 0 : index
    %c0_8 = arith.constant 0 : index
    %4 = vector.load %arg4[%c0_7, %c0_8] : memref<32x1xf32, #tpu.memory_space<vmem>>, vector<32x1xf32>
    %cst_9 = arith.constant 0.000000e+00 : f32
    %5 = vector.broadcast %cst_9 : f32 to vector<2x32x16xf32>
    %c0_10 = arith.constant 0 : index
    %c0_11 = arith.constant 0 : index
    %c0_12 = arith.constant 0 : index
    %6 = vector.load %arg6[%c0_10, %c0_11, %c0_12] : memref<2x1x20xf32, #tpu.memory_space<vmem>>, vector<2x1x16xf32>
    %c0_13 = arith.constant 0 : index
    %c0_14 = arith.constant 0 : index
    %c0_15 = arith.constant 0 : index
    %7 = vector.load %arg3[%c0_13, %c0_14, %c0_15] : memref<5x32x1xf32, #tpu.memory_space<vmem>>, vector<1x32x1xf32>
    %8 = vector.shape_cast %7 : vector<1x32x1xf32> to vector<32x1xf32>
    %9 = vector.shape_cast %8 : vector<32x1xf32> to vector<1x32x1xf32>
    %10 = vector.broadcast %9 : vector<1x32x1xf32> to vector<2x32x16xf32>
    %11 = vector.broadcast %6 : vector<2x1x16xf32> to vector<2x32x16xf32>
    %12 = arith.mulf %10, %11 : vector<2x32x16xf32>
    %13 = arith.addf %5, %12 : vector<2x32x16xf32>
    %c0_16 = arith.constant 0 : index
    %c0_17 = arith.constant 0 : index
    %c1 = arith.constant 1 : index
    %14 = vector.load %arg6[%c0_16, %c0_17, %c1] : memref<2x1x20xf32, #tpu.memory_space<vmem>>, vector<2x1x16xf32>
    %c1_18 = arith.constant 1 : index
    %c0_19 = arith.constant 0 : index
    %c0_20 = arith.constant 0 : index
    %15 = vector.load %arg3[%c1_18, %c0_19, %c0_20] : memref<5x32x1xf32, #tpu.memory_space<vmem>>, vector<1x32x1xf32>
    %16 = vector.shape_cast %15 : vector<1x32x1xf32> to vector<32x1xf32>
    %17 = vector.shape_cast %16 : vector<32x1xf32> to vector<1x32x1xf32>
    %18 = vector.broadcast %17 : vector<1x32x1xf32> to vector<2x32x16xf32>
    %19 = vector.broadcast %14 : vector<2x1x16xf32> to vector<2x32x16xf32>
    %20 = arith.mulf %18, %19 : vector<2x32x16xf32>
    %21 = arith.addf %13, %20 : vector<2x32x16xf32>
    %c0_21 = arith.constant 0 : index
    %c0_22 = arith.constant 0 : index
    %c2 = arith.constant 2 : index
    %22 = vector.load %arg6[%c0_21, %c0_22, %c2] : memref<2x1x20xf32, #tpu.memory_space<vmem>>, vector<2x1x16xf32>
    %c2_23 = arith.constant 2 : index
    %c0_24 = arith.constant 0 : index
    %c0_25 = arith.constant 0 : index
    %23 = vector.load %arg3[%c2_23, %c0_24, %c0_25] : memref<5x32x1xf32, #tpu.memory_space<vmem>>, vector<1x32x1xf32>
    %24 = vector.shape_cast %23 : vector<1x32x1xf32> to vector<32x1xf32>
    %25 = vector.shape_cast %24 : vector<32x1xf32> to vector<1x32x1xf32>
    %26 = vector.broadcast %25 : vector<1x32x1xf32> to vector<2x32x16xf32>
    %27 = vector.broadcast %22 : vector<2x1x16xf32> to vector<2x32x16xf32>
    %28 = arith.mulf %26, %27 : vector<2x32x16xf32>
    %29 = arith.addf %21, %28 : vector<2x32x16xf32>
    %c0_26 = arith.constant 0 : index
    %c0_27 = arith.constant 0 : index
    %c3 = arith.constant 3 : index
    %30 = vector.load %arg6[%c0_26, %c0_27, %c3] : memref<2x1x20xf32, #tpu.memory_space<vmem>>, vector<2x1x16xf32>
    %c3_28 = arith.constant 3 : index
    %c0_29 = arith.constant 0 : index
    %c0_30 = arith.constant 0 : index
    %31 = vector.load %arg3[%c3_28, %c0_29, %c0_30] : memref<5x32x1xf32, #tpu.memory_space<vmem>>, vector<1x32x1xf32>
    %32 = vector.shape_cast %31 : vector<1x32x1xf32> to vector<32x1xf32>
    %33 = vector.shape_cast %32 : vector<32x1xf32> to vector<1x32x1xf32>
    %34 = vector.broadcast %33 : vector<1x32x1xf32> to vector<2x32x16xf32>
    %35 = vector.broadcast %30 : vector<2x1x16xf32> to vector<2x32x16xf32>
    %36 = arith.mulf %34, %35 : vector<2x32x16xf32>
    %37 = arith.addf %29, %36 : vector<2x32x16xf32>
    %c0_31 = arith.constant 0 : index
    %c0_32 = arith.constant 0 : index
    %c4_33 = arith.constant 4 : index
    %38 = vector.load %arg6[%c0_31, %c0_32, %c4_33] : memref<2x1x20xf32, #tpu.memory_space<vmem>>, vector<2x1x16xf32>
    %c4_34 = arith.constant 4 : index
    %c0_35 = arith.constant 0 : index
    %c0_36 = arith.constant 0 : index
    %39 = vector.load %arg3[%c4_34, %c0_35, %c0_36] : memref<5x32x1xf32, #tpu.memory_space<vmem>>, vector<1x32x1xf32>
    %40 = vector.shape_cast %39 : vector<1x32x1xf32> to vector<32x1xf32>
    %41 = vector.shape_cast %40 : vector<32x1xf32> to vector<1x32x1xf32>
    %42 = vector.broadcast %41 : vector<1x32x1xf32> to vector<2x32x16xf32>
    %43 = vector.broadcast %38 : vector<2x1x16xf32> to vector<2x32x16xf32>
    %44 = arith.mulf %42, %43 : vector<2x32x16xf32>
    %45 = arith.addf %37, %44 : vector<2x32x16xf32>
    %46 = vector.shape_cast %4 : vector<32x1xf32> to vector<1x32x1xf32>
    %47 = vector.broadcast %46 : vector<1x32x1xf32> to vector<2x32x16xf32>
    %48 = arith.addf %45, %47 : vector<2x32x16xf32>
    %49 = math.tanh %48 : vector<2x32x16xf32>
    %c0_37 = arith.constant 0 : index
    %c0_38 = arith.constant 0 : index
    %c0_39 = arith.constant 0 : index
    %50 = vector.load %arg5[%c0_37, %c0_38, %c0_39] : memref<2x32x16xf32, #tpu.memory_space<vmem>>, vector<2x32x16xf32>
    tpu.vector_store %arg5[%c0_37, %c0_38, %c0_39], %49 {strides = array<i32>} : memref<2x32x16xf32, #tpu.memory_space<vmem>>, vector<2x32x16xf32>,
    return
  }
  func.func @transform_0(%arg0: i32, %arg1: i32) -> (i32, i32, i32) {
    %c0_i32 = arith.constant 0 : i32
    %c0_i32_0 = arith.constant 0 : i32
    %c0_i32_1 = arith.constant 0 : i32
    return %arg0, %c0_i32, %c0_i32_0 : i32, i32, i32
  }
  func.func @transform_1(%arg0: i32, %arg1: i32) -> (i32, i32, i32) {
    %c0_i32 = arith.constant 0 : i32
    %c0_i32_0 = arith.constant 0 : i32
    %c0_i32_1 = arith.constant 0 : i32
    %c0_i32_2 = arith.constant 0 : i32
    return %c0_i32, %c0_i32_0, %c0_i32_1 : i32, i32, i32
  }
  func.func @transform_2(%arg0: i32, %arg1: i32) -> (i32, i32) {
    %c0_i32 = arith.constant 0 : i32
    %c0_i32_0 = arith.constant 0 : i32
    %c0_i32_1 = arith.constant 0 : i32
    return %c0_i32, %c0_i32_0 : i32, i32
  }
  func.func @transform_3(%arg0: i32, %arg1: i32) -> (i32, i32, i32) {
    %c0_i32 = arith.constant 0 : i32
    %c0_i32_0 = arith.constant 0 : i32
    return %arg0, %c0_i32, %arg1 : i32, i32, i32
  }
}

</mosaic_0001>

<bundles_post_ra>
// kernel: context_embedding_forward.1
= control target key start
LH: loop header
LB: loop body
LE: loop exit
PB: predicated region body
PF: predicated region fallthrough
CT: control target
= control target key end

     0   :  { %vm14_vm0 = vcmask 24576   ;;  %v482_v0 = vmov 0   ;;  %v483_v3 = vmov 0.0   ;;  %s484_s16 = smov 4   ;;  %vm35_vm1 = vcmask 155680   ;;  %s487_s9 = smov 125   ;;  %s703_s1 = inlined_call_operand.vmem [shape: f32[5,32,1], index: 1, kind: input, shape index: {}]   ;;  %s704_s0 = inlined_call_operand.vmem [shape: f32[2,1,16], index: 0, kind: input, shape index: {}]   ;;  %s705_s2 = inlined_call_operand.vmem [shape: f32[32,1], index: 2, kind: input, shape index: {}]   ;;  %s706_s3 = inlined_call_operand.vmem [shape: f32[2,32,16], index: 3, kind: output, shape index: {}]  }
   0x1   :  { %464 = vset.pattern.permute.xlu1 %v482_v0  ;;  %v44_v1 = vld [vmem:[%s703_s1] sm:$0xff]  ;;  %465 = vset.pattern.permute.xlu0 %v482_v0  ;;  %15 = vst.msk [vmem:[#allocation2] sm:$0x1] %vm14_vm0, %v483_v3  ;;  %16 = vst.msk [vmem:[#allocation2 + $0x1] sm:$0x1] %vm14_vm0, %v483_v3  ;;  %v45_v4 = vld [vmem:[%s703_s1 + $0x8] sm:$0xff] }
   0x2   :  { %v437_v2 = vld [vmem:[%s704_s0] ss:$0 sm:$0xff]  ;;  %50 = vperm.xlu1 %464, %v44_v1   ;;  %v438_v5 = vld [vmem:[%s704_s0 + $0x1] ss:$0 sm:$0xff]  ;;  %v47_v6 = vld [vmem:[%s703_s1 + $0x18] sm:$0xff]  ;;  %s488_s10 = smov 124  }
   0x3   :  { %29 = vrot.lane.b32.xlu0 %v437_v2, %s484_s16  ;;  %v46_v7 = vld [vmem:[%s703_s1 + $0x10] sm:$0xff]  ;;  %v441_v8 = vld [vmem:[%s703_s1 + $0x20] sm:$0xff]  ;;  %v442_v9 = vld [vmem:[%s703_s1 + $0x28] sm:$0xff]  ;;  %vm424_vm2 = vcmask 130048  }
   0x4   :  { %v443_v10 = vld [vmem:[%s703_s1 + $0x30] sm:$0xff]  ;;  %v444_v11 = vld [vmem:[%s703_s1 + $0x38] sm:$0xff]  ;;  %v445_v12 = vld [vmem:[%s703_s1 + $0x40] sm:$0xff] }
   0x5   :  { %v446_v13 = vld [vmem:[%s703_s1 + $0x48] sm:$0xff]  ;;  %v447_v14 = vld [vmem:[%s703_s1 + $0x50] sm:$0xff]  ;;  %v448_v15 = vld [vmem:[%s703_s1 + $0x58] sm:$0xff] }
   0x6   :  { %55 = vperm.xlu1 %464, %v45_v4   ;;  %v449_v16 = vld [vmem:[%s703_s1 + $0x60] sm:$0xff]  ;;  %v450_v17 = vld [vmem:[%s703_s1 + $0x68] sm:$0xff]  ;;  %v451_v18 = vld [vmem:[%s703_s1 + $0x70] sm:$0xff] }
   0x7   :  { %31 = vrot.lane.b32.xlu0 %v438_v5, %s484_s16  ;;  %v452_v19 = vld [vmem:[%s703_s1 + $0x78] sm:$0xff]  ;;  %v453_v20 = vld [vmem:[%s703_s1 + $0x80] sm:$0xff]  ;;  %v454_v21 = vld [vmem:[%s703_s1 + $0x88] sm:$0xff] }
   0x8   :  { %v455_v22 = vld [vmem:[%s703_s1 + $0x90] sm:$0xff]  ;;  %v456_v23 = vld [vmem:[%s703_s1 + $0x98] sm:$0xff]  ;;  %v38_v24 = vld [vmem:[%s705_s2] sm:$0xff]  ;;  %s485_s1 = smov 127  }
   0x9   :  { %v39_v25 = vld [vmem:[%s705_s2 + $0x8] sm:$0xff]  ;;  %v40_v26 = vld [vmem:[%s705_s2 + $0x10] sm:$0xff]  ;;  %v41_v27 = vld [vmem:[%s705_s2 + $0x18] sm:$0xff]  ;;  %s486_s2 = smov 126  }
   0xa   :  { %65 = vperm.xlu1 %464, %v47_v6  }
   0xb   :  { %60 = vperm.xlu0 %465, %v46_v7  }
   0xe   :  { %103 = vperm.xlu1 %464, %v441_v8  }
   0xf   :  { %108 = vperm.xlu0 %465, %v442_v9  }
  0x12   :  { %113 = vperm.xlu1 %464, %v443_v10  }
  0x13   :  { %118 = vperm.xlu0 %465, %v444_v11  }
  0x16   :  { %176 = vperm.xlu1 %464, %v445_v12  }
  0x17   :  { %181 = vperm.xlu0 %465, %v446_v13  }
  0x1a   :  { %186 = vperm.xlu1 %464, %v447_v14  }
  0x1b   :  { %191 = vperm.xlu0 %465, %v448_v15  }
  0x1e   :  { %249 = vperm.xlu1 %464, %v449_v16  }
  0x1f   :  { %254 = vperm.xlu0 %465, %v450_v17  }
  0x22   :  { %259 = vperm.xlu1 %464, %v451_v18  }
  0x23   :  { %264 = vperm.xlu0 %465, %v452_v19  }
  0x26   :  { %322 = vperm.xlu1 %464, %v453_v20  }
  0x27   :  { %327 = vperm.xlu0 %465, %v454_v21  }
  0x2a   :  { %332 = vperm.xlu1 %464, %v455_v22  }
  0x2b   :  { %337 = vperm.xlu0 %465, %v456_v23  }
  0x2e   :  { %390 = vperm.xlu1 %464, %v38_v24  }
  0x2f   :  { %395 = vperm.xlu0 %465, %v39_v25  }
  0x32   :  { %400 = vperm.xlu1 %464, %v40_v26  }
  0x33   :  { %405 = vperm.xlu0 %465, %v41_v27  }
  0x75   :  { %v30_v28 = vpop.permute.xlu0 %29 }
  0x76   :  { %36 = vst.msk [vmem:[#allocation2] sm:$0x1] %vm35_vm1, %v30_v28 }
  0x79   :  { %v32_v29 = vpop.permute.xlu0 %31 }
  0x7a   :  { %37 = vst.msk [vmem:[#allocation2 + $0x1] sm:$0x1] %vm35_vm1, %v32_v29 }
  0x7d   :  { %v587_v30 = vld [vmem:[#allocation2] ss:$0 sm:$0xff]  ;;  %v51_v31 = vpop.permute.xlu1 %50 }
  0x7e   :  { %v590_v32 = vmul.f32 %v587_v30, %v51_v31 }
  0x81   :  { %v592_v33 = vld [vmem:[#allocation2 + $0x1] ss:$0 sm:$0xff]  ;;  %v56_v35 = vpop.permute.xlu1 %55 }
  0x82   :  { %v595_v34 = vmul.f32 %v592_v33, %v51_v31  ;;  %v598_v36 = vmul.f32 %v587_v30, %v56_v35  ;;  %v601_v37 = vmul.f32 %v592_v33, %v56_v35 }
  0x85   :  { %v66_v38 = vpop.permute.xlu1 %65 }
  0x86   :  { %v61_v39 = vpop.permute.xlu0 %60  ;;  %v604_v40 = vmul.f32 %v587_v30, %v66_v38  ;;  %v607_v41 = vmul.f32 %v592_v33, %v66_v38 }
  0x87   :  { %v610_v42 = vmul.f32 %v587_v30, %v61_v39  ;;  %v613_v43 = vmul.f32 %v592_v33, %v61_v39 }
  0x89   :  { %v104_v44 = vpop.permute.xlu1 %103 }
  0x8a   :  { %v109_v45 = vpop.permute.xlu0 %108  ;;  %v121_v46 = vmul.f32 %v587_v30, %v104_v44  ;;  %v125_v52 = vmul.f32 %v592_v33, %v104_v44 }
  0x8b   :  { %v122_v47 = vmul.f32 %v587_v30, %v109_v45  ;;  %v126_v53 = vmul.f32 %v592_v33, %v109_v45 }
  0x8c   :  { %137 = vrot.lane.b32.xlu1 %v121_v46, %s485_s1 }
  0x8d   :  { %139 = vrot.lane.b32.xlu0 %v122_v47, %s485_s1  ;;  %v114_v48 = vpop.permute.xlu1 %113 }
  0x8e   :  { %v119_v49 = vpop.permute.xlu0 %118  ;;  %v123_v50 = vmul.f32 %v587_v30, %v114_v48  ;;  %v127_v56 = vmul.f32 %v592_v33, %v114_v48 }
  0x8f   :  { %v124_v51 = vmul.f32 %v587_v30, %v119_v49  ;;  %v128_v57 = vmul.f32 %v592_v33, %v119_v49 }
  0x90   :  { %141 = vrot.lane.b32.xlu1 %v123_v50, %s485_s1 }
  0x91   :  { %143 = vrot.lane.b32.xlu0 %v124_v51, %s485_s1  ;;  %v177_v54 = vpop.permute.xlu1 %176 }
  0x92   :  { %v182_v55 = vpop.permute.xlu0 %181  ;;  %v194_v58 = vmul.f32 %v587_v30, %v177_v54  ;;  %v198_v0 = vmul.f32 %v592_v33, %v177_v54 }
  0x93   :  { %v195_v59 = vmul.f32 %v587_v30, %v182_v55  ;;  %v199_v1 = vmul.f32 %v592_v33, %v182_v55 }
  0x94   :  { %145 = vrot.lane.b32.xlu1 %v125_v52, %s485_s1 }
  0x95   :  { %147 = vrot.lane.b32.xlu0 %v126_v53, %s485_s1  ;;  %v187_v60 = vpop.permute.xlu1 %186 }
  0x96   :  { %v192_v61 = vpop.permute.xlu0 %191  ;;  %v196_v62 = vmul.f32 %v587_v30, %v187_v60  ;;  %v200_v4 = vmul.f32 %v592_v33, %v187_v60 }
  0x97   :  { %v197_v63 = vmul.f32 %v587_v30, %v192_v61  ;;  %v201_v5 = vmul.f32 %v592_v33, %v192_v61 }
  0x98   :  { %149 = vrot.lane.b32.xlu1 %v127_v56, %s485_s1 }
  0x99   :  { %151 = vrot.lane.b32.xlu0 %v128_v57, %s485_s1  ;;  %v250_v2 = vpop.permute.xlu1 %249 }
  0x9a   :  { %v255_v3 = vpop.permute.xlu0 %254  ;;  %v267_v6 = vmul.f32 %v587_v30, %v250_v2  ;;  %v271_v12 = vmul.f32 %v592_v33, %v250_v2 }
  0x9b   :  { %v268_v7 = vmul.f32 %v587_v30, %v255_v3  ;;  %v272_v13 = vmul.f32 %v592_v33, %v255_v3 }
  0x9c   :  { %210 = vrot.lane.b32.xlu1 %v194_v58, %s486_s2 }
  0x9d   :  { %212 = vrot.lane.b32.xlu0 %v195_v59, %s486_s2  ;;  %v260_v8 = vpop.permute.xlu1 %259 }
  0x9e   :  { %v265_v9 = vpop.permute.xlu0 %264  ;;  %v269_v10 = vmul.f32 %v587_v30, %v260_v8  ;;  %v273_v16 = vmul.f32 %v592_v33, %v260_v8 }
  0x9f   :  { %v270_v11 = vmul.f32 %v587_v30, %v265_v9  ;;  %v274_v17 = vmul.f32 %v592_v33, %v265_v9 }
  0xa0   :  { %214 = vrot.lane.b32.xlu1 %v196_v62, %s486_s2 }
  0xa1   :  { %216 = vrot.lane.b32.xlu0 %v197_v63, %s486_s2  ;;  %v323_v14 = vpop.permute.xlu1 %322 }
  0xa2   :  { %v328_v15 = vpop.permute.xlu0 %327  ;;  %v340_v18 = vmul.f32 %v587_v30, %v323_v14  ;;  %v344_v24 = vmul.f32 %v592_v33, %v323_v14 }
  0xa3   :  { %v341_v19 = vmul.f32 %v587_v30, %v328_v15  ;;  %v345_v25 = vmul.f32 %v592_v33, %v328_v15 }
  0xa4   :  { %218 = vrot.lane.b32.xlu1 %v198_v0, %s486_s2 }
  0xa5   :  { %220 = vrot.lane.b32.xlu0 %v199_v1, %s486_s2  ;;  %v333_v20 = vpop.permute.xlu1 %332 }
  0xa6   :  { %v338_v21 = vpop.permute.xlu0 %337  ;;  %v342_v22 = vmul.f32 %v587_v30, %v333_v20  ;;  %v346_v26 = vmul.f32 %v592_v33, %v333_v20 }
  0xa7   :  { %v343_v23 = vmul.f32 %v587_v30, %v338_v21  ;;  %v347_v27 = vmul.f32 %v592_v33, %v338_v21 }
  0xa8   :  { %222 = vrot.lane.b32.xlu1 %v200_v4, %s486_s2 }
  0xa9   :  { %224 = vrot.lane.b32.xlu0 %v201_v5, %s486_s2  ;;  %v647_v28 = vpop.permute.xlu1 %390 }
  0xaa   :  { %v649_v29 = vpop.permute.xlu0 %395 }
  0xac   :  { %283 = vrot.lane.b32.xlu1 %v267_v6, %s487_s9 }
  0xad   :  { %285 = vrot.lane.b32.xlu0 %v268_v7, %s487_s9  ;;  %v651_v31 = vpop.permute.xlu1 %400 }
  0xae   :  { %v653_v30 = vpop.permute.xlu0 %405 }
  0xb0   :  { %287 = vrot.lane.b32.xlu1 %v269_v10, %s487_s9 }
  0xb1   :  { %289 = vrot.lane.b32.xlu0 %v270_v11, %s487_s9 }
  0xb4   :  { %291 = vrot.lane.b32.xlu1 %v271_v12, %s487_s9 }
  0xb5   :  { %293 = vrot.lane.b32.xlu0 %v272_v13, %s487_s9 }
  0xb8   :  { %295 = vrot.lane.b32.xlu1 %v273_v16, %s487_s9 }
  0xb9   :  { %297 = vrot.lane.b32.xlu0 %v274_v17, %s487_s9 }
  0xbc   :  { %356 = vrot.lane.b32.xlu1 %v340_v18, %s488_s10 }
  0xbd   :  { %358 = vrot.lane.b32.xlu0 %v341_v19, %s488_s10 }
  0xc0   :  { %360 = vrot.lane.b32.xlu1 %v342_v22, %s488_s10 }
  0xc1   :  { %362 = vrot.lane.b32.xlu0 %v343_v23, %s488_s10 }
  0xc4   :  { %364 = vrot.lane.b32.xlu1 %v344_v24, %s488_s10 }
  0xc5   :  { %366 = vrot.lane.b32.xlu0 %v345_v25, %s488_s10 }
  0xc8   :  { %368 = vrot.lane.b32.xlu1 %v346_v26, %s488_s10 }
  0xc9   :  { %370 = vrot.lane.b32.xlu0 %v347_v27, %s488_s10 }
  0xfe   :  { %v138_v35 = vpop.permute.xlu1 %137 }
  0xff   :  { %v140_v38 = vpop.permute.xlu0 %139  ;;  %v161_v62 = vadd.f32 %v138_v35, %v590_v32 }
 0x100   :  { %v162_v63 = vadd.f32 %v140_v38, %v598_v36 }
 0x102   :  { %v142_v39 = vpop.permute.xlu1 %141 }
 0x103   :  { %v144_v44 = vpop.permute.xlu0 %143  ;;  %v163_v4 = vadd.f32 %v142_v39, %v610_v42 }
 0x104   :  { %v164_v5 = vadd.f32 %v144_v44, %v604_v40 }
 0x106   :  { %v146_v45 = vpop.permute.xlu1 %145 }
 0x107   :  { %v148_v46 = vpop.permute.xlu0 %147  ;;  %v165_v32 = vadd.f32 %v146_v45, %v595_v34 }
 0x108   :  { %v166_v36 = vadd.f32 %v148_v46, %v601_v37 }
 0x10a   :  { %v150_v47 = vpop.permute.xlu1 %149 }
 0x10b   :  { %v152_v48 = vpop.permute.xlu0 %151  ;;  %v167_v22 = vadd.f32 %v150_v47, %v613_v43 }
 0x10c   :  { %v168_v23 = vadd.f32 %v152_v48, %v607_v41 }
 0x10e   :  { %v211_v49 = vpop.permute.xlu1 %210 }
 0x10f   :  { %v213_v33 = vpop.permute.xlu0 %212  ;;  %v234_v2 = vadd.f32 %v211_v49, %v161_v62 }
 0x110   :  { %v235_v3 = vadd.f32 %v213_v33, %v162_v63 }
 0x112   :  { %v215_v50 = vpop.permute.xlu1 %214 }
 0x113   :  { %v217_v51 = vpop.permute.xlu0 %216  ;;  %v236_v10 = vadd.f32 %v215_v50, %v163_v4 }
 0x114   :  { %v237_v11 = vadd.f32 %v217_v51, %v164_v5 }
 0x116   :  { %v219_v52 = vpop.permute.xlu1 %218 }
 0x117   :  { %v221_v53 = vpop.permute.xlu0 %220  ;;  %v238_v17 = vadd.f32 %v219_v52, %v165_v32 }
 0x118   :  { %v239_v19 = vadd.f32 %v221_v53, %v166_v36 }
 0x11a   :  { %v223_v54 = vpop.permute.xlu1 %222 }
 0x11b   :  { %v225_v55 = vpop.permute.xlu0 %224  ;;  %v240_v26 = vadd.f32 %v223_v54, %v167_v22 }
 0x11c   :  { %v241_v38 = vadd.f32 %v225_v55, %v168_v23 }
 0x11e   :  { %v284_v56 = vpop.permute.xlu1 %283 }
 0x11f   :  { %v286_v57 = vpop.permute.xlu0 %285  ;;  %v307_v6 = vadd.f32 %v284_v56, %v234_v2 }
 0x120   :  { %v308_v7 = vadd.f32 %v286_v57, %v235_v3 }
 0x122   :  { %v288_v58 = vpop.permute.xlu1 %287 }
 0x123   :  { %v290_v59 = vpop.permute.xlu0 %289  ;;  %v309_v14 = vadd.f32 %v288_v58, %v236_v10 }
 0x124   :  { %v310_v15 = vadd.f32 %v290_v59, %v237_v11 }
 0x126   :  { %v292_v60 = vpop.permute.xlu1 %291 }
 0x127   :  { %v294_v61 = vpop.permute.xlu0 %293  ;;  %v311_v34 = vadd.f32 %v292_v60, %v238_v17 }
 0x128   :  { %v312_v37 = vadd.f32 %v294_v61, %v239_v19 }
 0x12a   :  { %v296_v0 = vpop.permute.xlu1 %295 }
 0x12b   :  { %v298_v1 = vpop.permute.xlu0 %297  ;;  %v313_v45 = vadd.f32 %v296_v0, %v240_v26 }
 0x12c   :  { %v314_v46 = vadd.f32 %v298_v1, %v241_v38 }
 0x12e   :  { %v357_v8 = vpop.permute.xlu1 %356 }
 0x12f   :  { %v359_v9 = vpop.permute.xlu0 %358  ;;  %v380_v12 = vadd.f32 %v357_v8, %v307_v6 }
 0x130   :  { %v381_v13 = vadd.f32 %v359_v9, %v308_v7 }
 0x131   :  { %v408_v16 = vadd.f32 %v647_v28, %v380_v12 }
 0x132   :  { %v409_v42 = vadd.f32 %v649_v29, %v381_v13  ;;  %v361_v40 = vpop.permute.xlu1 %360 }
 0x133   :  { %v363_v18 = vpop.permute.xlu0 %362  ;;  %466 = vtanh.f32 %v408_v16  ;;  %v382_v20 = vadd.f32 %v361_v40, %v309_v14 }
 0x134   :  { %v383_v21 = vadd.f32 %v363_v18, %v310_v15  ;;  %468 = vtanh.f32 %v409_v42 }
 0x135   :  { %v410_v24 = vadd.f32 %v651_v31, %v382_v20 }
 0x136   :  { %v411_v25 = vadd.f32 %v653_v30, %v383_v21  ;;  %v365_v27 = vpop.permute.xlu1 %364 }
 0x137   :  { %v367_v35 = vpop.permute.xlu0 %366  ;;  %470 = vtanh.f32 %v410_v24  ;;  %v384_v39 = vadd.f32 %v365_v27, %v311_v34 }
 0x138   :  { %v385_v44 = vadd.f32 %v367_v35, %v312_v37  ;;  %472 = vtanh.f32 %v411_v25 }
 0x139   :  { %v412_v43 = vadd.f32 %v647_v28, %v384_v39 }
 0x13a   :  { %v413_v41 = vadd.f32 %v649_v29, %v385_v44  ;;  %v369_v47 = vpop.permute.xlu1 %368 }
 0x13b   :  { %v371_v48 = vpop.permute.xlu0 %370  ;;  %474 = vtanh.f32 %v412_v43  ;;  %v386_v49 = vadd.f32 %v369_v47, %v313_v45 }
 0x13c   :  { %v387_v33 = vadd.f32 %v371_v48, %v314_v46  ;;  %476 = vtanh.f32 %v413_v41 }
 0x13d   :  { %v414_v50 = vadd.f32 %v651_v31, %v386_v49 }
 0x13e   :  { %v415_v51 = vadd.f32 %v653_v30, %v387_v33 }
 0x13f   :  { %478 = vtanh.f32 %v414_v50 }
 0x140   :  { %v467_v52 = vpop.eup %466  ;;  %480 = vtanh.f32 %v415_v51 }
 0x141   :  { %v469_v53 = vpop.eup %468  ;;  %425 = vst.msk [vmem:[%s706_s3] sm:$0xff] %vm424_vm2, %v467_v52 }
 0x142   :  { %426 = vst.msk [vmem:[%s706_s3 + $0x8] sm:$0xff] %vm424_vm2, %v469_v53 }
 0x144   :  { %v471_v28 = vpop.eup %470 }
 0x145   :  { %v473_v29 = vpop.eup %472  ;;  %427 = vst.msk [vmem:[%s706_s3 + $0x10] sm:$0xff] %vm424_vm2, %v471_v28 }
 0x146   :  { %428 = vst.msk [vmem:[%s706_s3 + $0x18] sm:$0xff] %vm424_vm2, %v473_v29 }
 0x148   :  { %v475_v31 = vpop.eup %474 }
 0x149   :  { %v477_v30 = vpop.eup %476  ;;  %429 = vst.msk [vmem:[%s706_s3 + $0x20] sm:$0xff] %vm424_vm2, %v475_v31 }
 0x14a   :  { %430 = vst.msk [vmem:[%s706_s3 + $0x28] sm:$0xff] %vm424_vm2, %v477_v30 }
 0x14c   :  { %v479_v54 = vpop.eup %478 }
 0x14d   :  { %v481_v55 = vpop.eup %480  ;;  %431 = vst.msk [vmem:[%s706_s3 + $0x30] sm:$0xff] %vm424_vm2, %v479_v54 }
 0x14e   :  { %432 = vst.msk [vmem:[%s706_s3 + $0x38] sm:$0xff] %vm424_vm2, %v481_v55 }

</bundles_post_ra>
